<compile_context>
chip_gen: v7x
topology: tpu7x:2x2x1
jax: 0.10.0
libtpu: 0.0.40
codegen_flags: <defaults>
</compile_context>

<pallas_src>
import functools

import jax
import jax.numpy as jnp
from jax.experimental import pallas as pl
from jax.experimental.pallas import tpu as pltpu


def _attention_kernel(enc_ref, dec_ref,
                      we_ref, be_ref,
                      wd_ref, bd_ref,
                      wa_ref,
                      z_ref, alpha_ref, *, p_valid):
    bt, p_pad, e_dim = enc_ref.shape
    a_pad = we_ref.shape[1]

    enc = enc_ref[...]                                     # (Bt, Pp, E) bf16
    # Layout-preserving merge (P padded to a multiple of 16 for bf16 tiling).
    enc2d = enc.reshape(bt * p_pad, e_dim)                 # (Bt*Pp, E)

    # Encoder projection: bf16 MXU inputs, f32 accumulation.
    enc_att = jnp.dot(enc2d, we_ref[...],
                      preferred_element_type=jnp.float32)  # (Bt*Pp, Ap) f32
    enc_att = enc_att.reshape(bt, p_pad, a_pad) + be_ref[...]

    # Decoder projection hoisted over the tile: (Bt, Ap) f32.
    dec_att = jnp.dot(dec_ref[...], wd_ref[...],
                      preferred_element_type=jnp.float32) + bd_ref[...]

    # relu(enc_att + dec_att) broadcast per sample, all in f32 (VPU).
    h = jnp.maximum(enc_att + dec_att[:, None, :], 0.0)    # (Bt, Pp, Ap)

    # Attention logits: VPU multiply + lane reduction (no N=1 matmul).
    e = jnp.sum(h * wa_ref[...][None, :, :], axis=-1)      # (Bt, Pp)

    # Mask padded pixels so they get zero attention weight.
    if p_valid < p_pad:
        col = jax.lax.broadcasted_iota(jnp.int32, (bt, p_pad), 1)
        e = jnp.where(col < p_valid, e, -1e30)

    # Softmax over the pixel (lane) axis, numerically stabilized.
    m = jnp.max(e, axis=-1, keepdims=True)                 # (Bt, 1)
    pexp = jnp.exp(e - m)                                  # (Bt, Pp)
    denom = jnp.sum(pexp, axis=-1, keepdims=True)          # (Bt, 1)
    inv = pl.reciprocal(denom, approx=True)                # EUP vrcp
    inv = inv * (2.0 - denom * inv)                        # one Newton step
    alpha = pexp * inv                                     # (Bt, Pp) f32

    # Attention-weighted encoding on the VPU/XLU path (frees the MXU slot):
    #   z[b, e] = sum_p alpha[b, p] * enc[b, p, e]
    z = jnp.sum(alpha[:, :, None] * enc.astype(jnp.float32), axis=1)  # (Bt, E)

    z_ref[...] = z.astype(z_ref.dtype)
    alpha_ref[...] = alpha.astype(alpha_ref.dtype)         # lane-dense (Bt, Pp)


def _round_up(x, m):
    return ((x + m - 1) // m) * m


def _vmem_limit_bytes():
    """Generation-aware VMEM request: ~75% of the part's capacity, <= 100 MiB."""
    cap = 64 << 20  # conservative fallback (v7x per-TC capacity)
    try:
        info = pltpu.get_tpu_info()
        cap = int(getattr(info, "vmem_capacity_bytes", cap))
    except Exception:
        pass
    return min(int(cap * 3 // 4), 100 << 20)


def _choose_batch_tile(B, P_pad, E, D, A_pad, vmem_limit):
    """Largest legal batch tile under the VMEM budget, with >= 2 grid steps."""
    per_sample = (
        2 * P_pad * E * 2          # encoder block, bf16, double-buffered
        + 2 * P_pad * A_pad * 4    # enc_att + relu intermediates, f32
        + P_pad * E * 4            # alpha*enc weighted intermediate for z, f32
        + 8 * P_pad * 4            # logits / alpha (+ double-buffered output)
        + 4 * E * 4                # z (+ double-buffered output)
        + 2 * D * 2                # decoder block, bf16, double-buffered
    )
    resident = 2 * 2 * (E + D) * A_pad + 2 * 3 * A_pad * 4  # weights + biases
    budget = max(int(vmem_limit * 0.6) - resident, per_sample)
    max_bt = max(1, budget // per_sample)
    # Keep at least 2 grid steps so dual-TensorCore chips (v7x) shard the work.
    if B >= 2:
        max_bt = min(max_bt, B // 2)
    # Prefer the largest multiple-of-8 divisor of B (sublane-aligned blocks).
    bt = (max_bt // 8) * 8
    while bt >= 8:
        if B % bt == 0:
            return bt
        bt -= 8
    # Fallback: full batch in a single step (block == full dim is always legal).
    return B


def attention_forward(encoder_out, decoder_hidden, params, *, batch_tile=None):
    """encoder_out: (B, P, E) f32, decoder_hidden: (B, D) f32."""
    B, P, E = encoder_out.shape
    D = decoder_hidden.shape[1]
    A = params["we"].shape[0]          # PyTorch Linear weight is (out, in)

    A_pad = _round_up(A, 128)          # lane-dense attention dim (zero padded)
    P_pad = _round_up(P, 16)           # bf16 sublane tile for the enc merge

    vmem_limit = _vmem_limit_bytes()
    if batch_tile is None:
        batch_tile = _choose_batch_tile(B, P_pad, E, D, A_pad, vmem_limit)
    assert B % batch_tile == 0, "batch_tile must divide the batch size"
    assert batch_tile % 8 == 0 or batch_tile == B, \
        "batch_tile must be a multiple of 8 or the full batch"
    Bt = batch_tile
    grid = (B // Bt,)

    # Glue (wrapper-side, cheap): transpose weights to (in, out), cast matmul
    # inputs to bf16, zero-pad the attention dim to A_pad and pixels to P_pad.
    # The atten_layer bias `ba` is dropped: it is a uniform logit shift and is
    # softmax-invariant, so alpha and z are unchanged.
    we_t = jnp.pad(params["we"].T.astype(jnp.bfloat16), ((0, 0), (0, A_pad - A)))
    wd_t = jnp.pad(params["wd"].T.astype(jnp.bfloat16), ((0, 0), (0, A_pad - A)))
    be = jnp.pad(params["be"].reshape(1, A).astype(jnp.float32), ((0, 0), (0, A_pad - A)))
    bd = jnp.pad(params["bd"].reshape(1, A).astype(jnp.float32), ((0, 0), (0, A_pad - A)))
    wa_r = jnp.pad(params["wa"].reshape(1, A).astype(jnp.float32), ((0, 0), (0, A_pad - A)))
    enc_p = jnp.pad(encoder_out.astype(jnp.bfloat16),
                    ((0, 0), (0, P_pad - P), (0, 0)))
    dec_b = decoder_hidden.astype(jnp.bfloat16)

    kernel = functools.partial(_attention_kernel, p_valid=P)

    z, alpha_pad = pl.pallas_call(
        kernel,
        out_shape=(
            jax.ShapeDtypeStruct((B, E), jnp.float32),       # z
            jax.ShapeDtypeStruct((B, P_pad), jnp.float32),   # alpha (padded)
        ),
        grid_spec=pltpu.PrefetchScalarGridSpec(
            num_scalar_prefetch=0,
            grid=grid,
            in_specs=[
                pl.BlockSpec((Bt, P_pad, E), lambda b: (b, 0, 0)),  # encoder tile
                pl.BlockSpec((Bt, D), lambda b: (b, 0)),            # decoder tile
                pl.BlockSpec((E, A_pad), lambda b: (0, 0)),         # We^T (resident)
                pl.BlockSpec((1, A_pad), lambda b: (0, 0)),         # be
                pl.BlockSpec((D, A_pad), lambda b: (0, 0)),         # Wd^T (resident)
                pl.BlockSpec((1, A_pad), lambda b: (0, 0)),         # bd
                pl.BlockSpec((1, A_pad), lambda b: (0, 0)),         # Wa row
            ],
            out_specs=[
                pl.BlockSpec((Bt, E), lambda b: (b, 0)),
                pl.BlockSpec((Bt, P_pad), lambda b: (b, 0)),
            ],
        ),
        compiler_params=pltpu.CompilerParams(
            dimension_semantics=("parallel",),
            vmem_limit_bytes=vmem_limit),
    )(enc_p, dec_b, we_t, be, wd_t, bd, wa_r)

    return z, alpha_pad[:, :P]


def _reference(encoder_out, decoder_hidden, params):
    ea = encoder_out @ params["we"].T + params["be"]
    da = decoder_hidden @ params["wd"].T + params["bd"]
    e = (jnp.maximum(ea + da[:, None, :], 0.0) @ params["wa"].T + params["ba"])[..., 0]
    alpha = jax.nn.softmax(e, axis=1)
    z = (alpha[:, :, None] * encoder_out).sum(axis=1)
    return z, alpha


if __name__ == "__main__":
    # Small shapes consistent with the module's forward.
    B, P = 16, 8           # batch, num_pixels
    E, D, A = 32, 24, 16   # encoder_dim, decoder_dim, attention_dim

    key = jax.random.PRNGKey(0)
    k = jax.random.split(key, 8)

    encoder_out = jax.random.normal(k[0], (B, P, E), dtype=jnp.float32)
    decoder_hidden = jax.random.normal(k[1], (B, D), dtype=jnp.float32)

    # Deterministic parameter init (PyTorch Linear weight shape = (out, in)).
    params = {
        "we": 0.1 * jax.random.normal(k[2], (A, E), dtype=jnp.float32),
        "be": 0.1 * jax.random.normal(k[3], (A,), dtype=jnp.float32),
        "wd": 0.1 * jax.random.normal(k[4], (A, D), dtype=jnp.float32),
        "bd": 0.1 * jax.random.normal(k[5], (A,), dtype=jnp.float32),
        "wa": 0.1 * jax.random.normal(k[6], (1, A), dtype=jnp.float32),
        "ba": 0.1 * jax.random.normal(k[7], (1,), dtype=jnp.float32),
    }

    z, alpha = attention_forward(encoder_out, decoder_hidden, params)
    jax.block_until_ready((z, alpha))

    z_ref, alpha_ref = _reference(encoder_out, decoder_hidden, params)
    assert z.shape == (B, E) and alpha.shape == (B, P)
    # bf16 MXU inputs / bf16 encoder tile vs. the full-f32 reference: use a
    # bf16-appropriate tolerance (observed error is a few 1e-3).
    assert jnp.allclose(alpha, alpha_ref, atol=2e-2, rtol=2e-2), \
        float(jnp.max(jnp.abs(alpha - alpha_ref)))
    assert jnp.allclose(z, z_ref, atol=2e-2, rtol=2e-2), \
        float(jnp.max(jnp.abs(z - z_ref)))

    print("KERNEL_OK")
</pallas_src>

<mosaic_0001>
module attributes {stable_mosaic.version = 11 : i64} {
  func.func @_attention_kernel(%arg0: i32, %arg1: memref<8x16x32xbf16, #tpu.memory_space<vmem>>, %arg2: memref<8x24xbf16, #tpu.memory_space<vmem>>, %arg3: memref<32x128xbf16, #tpu.memory_space<vmem>>, %arg4: memref<1x128xf32, #tpu.memory_space<vmem>>, %arg5: memref<24x128xbf16, #tpu.memory_space<vmem>>, %arg6: memref<1x128xf32, #tpu.memory_space<vmem>>, %arg7: memref<1x128xf32, #tpu.memory_space<vmem>>, %arg8: memref<8x32xf32, #tpu.memory_space<vmem>>, %arg9: memref<8x16xf32, #tpu.memory_space<vmem>>) attributes {dimension_semantics = [#tpu.dimension_semantics<parallel>], iteration_bounds = array<i64: 2>, scalar_prefetch = 0 : i64, scratch_operands = 0 : i64, tpu.core_type = #tpu.core_type<tc>, window_params = [{transform_indices = @transform_0, window_bounds = array<i64: 8, 16, 32>}, {transform_indices = @transform_1, window_bounds = array<i64: 8, 24>}, {pipeline_mode = #tpu.pipeline_mode<synchronous>, transform_indices = @transform_2, window_bounds = array<i64: 32, 128>}, {pipeline_mode = #tpu.pipeline_mode<synchronous>, transform_indices = @transform_3, window_bounds = array<i64: 1, 128>}, {pipeline_mode = #tpu.pipeline_mode<synchronous>, transform_indices = @transform_4, window_bounds = array<i64: 24, 128>}, {pipeline_mode = #tpu.pipeline_mode<synchronous>, transform_indices = @transform_5, window_bounds = array<i64: 1, 128>}, {pipeline_mode = #tpu.pipeline_mode<synchronous>, transform_indices = @transform_6, window_bounds = array<i64: 1, 128>}, {transform_indices = @transform_7, window_bounds = array<i64: 8, 32>}, {transform_indices = @transform_8, window_bounds = array<i64: 8, 16>}]} {
    %c0 = arith.constant 0 : index
    %c0_0 = arith.constant 0 : index
    %c0_1 = arith.constant 0 : index
    %0 = vector.load %arg1[%c0, %c0_0, %c0_1] : memref<8x16x32xbf16, #tpu.memory_space<vmem>>, vector<8x16x32xbf16>
    %1 = vector.shape_cast %0 : vector<8x16x32xbf16> to vector<128x32xbf16>
    %c0_2 = arith.constant 0 : index
    %c0_3 = arith.constant 0 : index
    %2 = vector.load %arg3[%c0_2, %c0_3] : memref<32x128xbf16, #tpu.memory_space<vmem>>, vector<32x128xbf16>
    %cst = arith.constant dense<0.000000e+00> : vector<128x128xf32>
    %3 = tpu.matmul %1, %2, %cst {dimension_numbers = #tpu.dot_dimension_numbers<[1], [0], [0], [1], [0, 0, 1, 1], [], []>} : vector<128x32xbf16>, vector<32x128xbf16>, vector<128x128xf32> -> vector<128x128xf32>
    %4 = vector.shape_cast %3 : vector<128x128xf32> to vector<8x16x128xf32>
    %c0_4 = arith.constant 0 : index
    %c0_5 = arith.constant 0 : index
    %5 = vector.load %arg4[%c0_4, %c0_5] : memref<1x128xf32, #tpu.memory_space<vmem>>, vector<1x128xf32>
    %6 = vector.shape_cast %5 : vector<1x128xf32> to vector<1x1x128xf32>
    %7 = vector.broadcast %6 : vector<1x1x128xf32> to vector<8x16x128xf32>
    %8 = arith.addf %4, %7 : vector<8x16x128xf32>
    %c0_6 = arith.constant 0 : index
    %c0_7 = arith.constant 0 : index
    %9 = vector.load %arg2[%c0_6, %c0_7] : memref<8x24xbf16, #tpu.memory_space<vmem>>, vector<8x24xbf16>
    %c0_8 = arith.constant 0 : index
    %c0_9 = arith.constant 0 : index
    %10 = vector.load %arg5[%c0_8, %c0_9] : memref<24x128xbf16, #tpu.memory_space<vmem>>, vector<24x128xbf16>
    %cst_10 = arith.constant dense<0.000000e+00> : vector<8x128xf32>
    %11 = tpu.matmul %9, %10, %cst_10 {dimension_numbers = #tpu.dot_dimension_numbers<[1], [0], [0], [1], [0, 0, 1, 1], [], []>} : vector<8x24xbf16>, vector<24x128xbf16>, vector<8x128xf32> -> vector<8x128xf32>
    %c0_11 = arith.constant 0 : index
    %c0_12 = arith.constant 0 : index
    %12 = vector.load %arg6[%c0_11, %c0_12] : memref<1x128xf32, #tpu.memory_space<vmem>>, vector<1x128xf32>
    %13 = vector.broadcast %12 : vector<1x128xf32> to vector<8x128xf32>
    %14 = arith.addf %11, %13 : vector<8x128xf32>
    %15 = vector.shape_cast %14 : vector<8x128xf32> to vector<8x1x128xf32>
    %16 = vector.broadcast %15 : vector<8x1x128xf32> to vector<8x16x128xf32>
    %17 = arith.addf %8, %16 : vector<8x16x128xf32>
    %cst_13 = arith.constant 0.000000e+00 : f32
    %18 = vector.broadcast %cst_13 : f32 to vector<8x16x128xf32>
    %19 = arith.maximumf %17, %18 : vector<8x16x128xf32>
    %c0_14 = arith.constant 0 : index
    %c0_15 = arith.constant 0 : index
    %20 = vector.load %arg7[%c0_14, %c0_15] : memref<1x128xf32, #tpu.memory_space<vmem>>, vector<1x128xf32>
    %21 = vector.shape_cast %20 : vector<1x128xf32> to vector<1x1x128xf32>
    %22 = vector.broadcast %21 : vector<1x1x128xf32> to vector<8x16x128xf32>
    %23 = arith.mulf %19, %22 : vector<8x16x128xf32>
    %cst_16 = arith.constant dense<0.000000e+00> : vector<8x16xf32>
    %24 = vector.multi_reduction <add>, %23, %cst_16 [2] : vector<8x16x128xf32> to vector<8x16xf32>
    %25 = tpu.iota {dimensions = array<i32: 1>} : vector<8x16xi32>
    %c8_i32 = arith.constant 8 : i32
    %26 = vector.broadcast %c8_i32 : i32 to vector<8x16xi32>
    %27 = arith.cmpi slt, %25, %26 : vector<8x16xi32>
    %cst_17 = arith.constant -1.000000e+30 : f32
    %28 = vector.broadcast %cst_17 : f32 to vector<8x16xf32>
    %29 = arith.select %27, %24, %28 : vector<8x16xi1>, vector<8x16xf32>
    %cst_18 = arith.constant dense<0xFF800000> : vector<8xf32>
    %30 = vector.multi_reduction <maximumf>, %29, %cst_18 [1] : vector<8x16xf32> to vector<8xf32>
    %31 = vector.shape_cast %30 : vector<8xf32> to vector<8x1xf32>
    %32 = vector.broadcast %31 : vector<8x1xf32> to vector<8x16xf32>
    %33 = arith.subf %29, %32 : vector<8x16xf32>
    %34 = math.exp %33 : vector<8x16xf32>
    %cst_19 = arith.constant dense<0.000000e+00> : vector<8xf32>
    %35 = vector.multi_reduction <add>, %34, %cst_19 [1] : vector<8x16xf32> to vector<8xf32>
    %36 = vector.shape_cast %35 : vector<8xf32> to vector<8x1xf32>
    %37 = tpu.reciprocal %36 {approx = true} : vector<8x1xf32> -> vector<8x1xf32>
    %38 = arith.mulf %36, %37 : vector<8x1xf32>
    %cst_20 = arith.constant 2.000000e+00 : f32
    %39 = vector.broadcast %cst_20 : f32 to vector<8x1xf32>
    %40 = arith.subf %39, %38 : vector<8x1xf32>
    %41 = arith.mulf %37, %40 : vector<8x1xf32>
    %42 = vector.broadcast %41 : vector<8x1xf32> to vector<8x16xf32>
    %43 = arith.mulf %34, %42 : vector<8x16xf32>
    %44 = vector.shape_cast %43 : vector<8x16xf32> to vector<8x16x1xf32>
    %45 = arith.extf %0 : vector<8x16x32xbf16> to vector<8x16x32xf32>
    %46 = vector.broadcast %44 : vector<8x16x1xf32> to vector<8x16x32xf32>
    %47 = arith.mulf %46, %45 : vector<8x16x32xf32>
    %cst_21 = arith.constant dense<0.000000e+00> : vector<8x32xf32>
    %48 = vector.multi_reduction <add>, %47, %cst_21 [1] : vector<8x16x32xf32> to vector<8x32xf32>
    %c0_22 = arith.constant 0 : index
    %c0_23 = arith.constant 0 : index
    %49 = vector.load %arg8[%c0_22, %c0_23] : memref<8x32xf32, #tpu.memory_space<vmem>>, vector<8x32xf32>
    tpu.vector_store %arg8[%c0_22, %c0_23], %48 {strides = array<i32>} : memref<8x32xf32, #tpu.memory_space<vmem>>, vector<8x32xf32>,
    %c0_24 = arith.constant 0 : index
    %c0_25 = arith.constant 0 : index
    %50 = vector.load %arg9[%c0_24, %c0_25] : memref<8x16xf32, #tpu.memory_space<vmem>>, vector<8x16xf32>
    tpu.vector_store %arg9[%c0_24, %c0_25], %43 {strides = array<i32>} : memref<8x16xf32, #tpu.memory_space<vmem>>, vector<8x16xf32>,
    return
  }
  func.func @transform_0(%arg0: i32) -> (i32, i32, i32) {
    %c0_i32 = arith.constant 0 : i32
    %c0_i32_0 = arith.constant 0 : i32
    %c0_i32_1 = arith.constant 0 : i32
    return %arg0, %c0_i32, %c0_i32_0 : i32, i32, i32
  }
  func.func @transform_1(%arg0: i32) -> (i32, i32) {
    %c0_i32 = arith.constant 0 : i32
    %c0_i32_0 = arith.constant 0 : i32
    return %arg0, %c0_i32 : i32, i32
  }
  func.func @transform_2(%arg0: i32) -> (i32, i32) {
    %c0_i32 = arith.constant 0 : i32
    %c0_i32_0 = arith.constant 0 : i32
    %c0_i32_1 = arith.constant 0 : i32
    return %c0_i32, %c0_i32_0 : i32, i32
  }
  func.func @transform_3(%arg0: i32) -> (i32, i32) {
    %c0_i32 = arith.constant 0 : i32
    %c0_i32_0 = arith.constant 0 : i32
    %c0_i32_1 = arith.constant 0 : i32
    return %c0_i32, %c0_i32_0 : i32, i32
  }
  func.func @transform_4(%arg0: i32) -> (i32, i32) {
    %c0_i32 = arith.constant 0 : i32
    %c0_i32_0 = arith.constant 0 : i32
    %c0_i32_1 = arith.constant 0 : i32
    return %c0_i32, %c0_i32_0 : i32, i32
  }
  func.func @transform_5(%arg0: i32) -> (i32, i32) {
    %c0_i32 = arith.constant 0 : i32
    %c0_i32_0 = arith.constant 0 : i32
    %c0_i32_1 = arith.constant 0 : i32
    return %c0_i32, %c0_i32_0 : i32, i32
  }
  func.func @transform_6(%arg0: i32) -> (i32, i32) {
    %c0_i32 = arith.constant 0 : i32
    %c0_i32_0 = arith.constant 0 : i32
    %c0_i32_1 = arith.constant 0 : i32
    return %c0_i32, %c0_i32_0 : i32, i32
  }
  func.func @transform_7(%arg0: i32) -> (i32, i32) {
    %c0_i32 = arith.constant 0 : i32
    %c0_i32_0 = arith.constant 0 : i32
    return %arg0, %c0_i32 : i32, i32
  }
  func.func @transform_8(%arg0: i32) -> (i32, i32) {
    %c0_i32 = arith.constant 0 : i32
    %c0_i32_0 = arith.constant 0 : i32
    return %arg0, %c0_i32 : i32, i32
  }
}

</mosaic_0001>

<bundles_post_ra>
// kernel: tpu_custom_call.1
= control target key start
LH: loop header
LB: loop body
LE: loop exit
PB: predicated region body
PF: predicated region fallthrough
CT: control target
= control target key end

     0   :  { %s2226_s0 = inlined_call_operand.hbm [shape: bf16[16,16,32], index: 0, kind: input, shape index: {}]   ;;  %s2227_s1 = inlined_call_operand.hbm [shape: bf16[16,24], index: 1, kind: input, shape index: {}]   ;;  %s2228_s2 = inlined_call_operand.hbm [shape: bf16[32,128], index: 2, kind: input, shape index: {}]   ;;  %s2229_s3 = inlined_call_operand.vmem [shape: f32[1,128], index: 3, kind: input, shape index: {}]   ;;  %s2230_s4 = inlined_call_operand.vmem [shape: bf16[24,128], index: 4, kind: input, shape index: {}]   ;;  %s2231_s5 = inlined_call_operand.vmem [shape: f32[1,128], index: 5, kind: input, shape index: {}]   ;;  %s2232_s6 = inlined_call_operand.vmem [shape: f32[1,128], index: 6, kind: input, shape index: {}]   ;;  %s2233_s7 = inlined_call_operand.hbm [shape: f32[16,32], index: 7, kind: output, shape index: {0}]   ;;  %s2234_s8 = inlined_call_operand.hbm [shape: f32[16,16], index: 8, kind: output, shape index: {1}]  }
   0x1   :  { %2245 = sst [smem:[#allocation20_spill]] %s2226_s0 }
   0x2   :  { %2246 = sst [smem:[#allocation21_spill]] %s2228_s2 }
   0x3   :  { %14 = vsyncpa [#allocation3], 0 }
   0x4   :  { %16 = vsyncpa [#allocation3 + $0x1], 0 }
   0x5   :  { %17 = vsyncpa [#allocation6], 0 }
   0x6   :  { %19 = vsyncpa [#allocation6 + $0x1], 0 }
   0x7   :  { %20 = vsyncpa [#allocation4], 0 }
   0x8   :  { %22 = vsyncpa [#allocation4 + $0x1], 0 }
   0x9   :  { %23 = vsyncpa [#allocation10], 0 }
   0xa   :  { %25 = vsyncpa [#allocation10 + $0x1], 0  ;;  %s1791_s27 = smov 0   ;;  %s1793_s28 = smov 0  }
   0xb   :  { %s1795_s29 = smov 0   ;;  %s1797_s30 = smov 0  }
   0xc LB: > { %2247 = sst [smem:[#allocation16_spill]] %s1730_s29  ;;  %s1812_s9 = sadd.s32 4294967295, %s1734_s30   ;;  %s1734_s30 = sphi %s1797_s30, %s2271_s30   ;;  %s1730_s29 = sphi %s1795_s29, %s2273_s29   ;;  %s1726_s28 = sphi %s1793_s28, %s2275_s28   ;;  %s1722_s27 = sphi %s1791_s27, %s2274_s27  }
   0xd   : > { %s1351_s10 = sadd.s32 4294967294, %s1734_s30   ;;  %p51_p0 = scmp.ne.s32.totalorder %s1726_s28, %s1722_s27 }
   0xe   : > { %p2235_p1 = scmp.eq.s32.totalorder %s1812_s9, 0  ;;  %p212_p3 = scmp.eq.s32.totalorder %s1351_s10, 1 }
   0xf   : > { %p1352_p5 = scmp.ge.s32.totalorder %s1734_s30, 1  ;;  %p245_p7 = scmp.lt.s32.totalorder %s1734_s30, 3 }
  0x10   : > { %p1821_p4 = por %p2235_p1, %p51_p0  ;;  %p1826_p6 = por %p212_p3, %p51_p0 }
  0x11   : > { %p1831_p8 = pnand %p1352_p5, %p245_p7  ;;  %s1736_s14 = smov [#allocation7]  }
  0x12   : > { %s2248_s11 = scalar_select %p1821_p4, 1, 0 }
  0x13   : > { %s2249_s12 = scalar_select %p1826_p6, 1, 0 }
  0x14   : > { %s2251_s13 = scalar_select %p1831_p8, 1, 0 }
  0x15   : > { %2250 = sst [smem:[#allocation17_spill]] %s2249_s12  ;;  %s257_s15 = sshll.u32 %s1736_s14, 4  ;;  %s1835_s15 = int_to_ptr.vmem [resolvable:$true] %s257_s15 }
  0x16   : > { %p1456_p9 = pneg %p1831_p8  ;;  %s1847_s17 = sadd.s32 1, %s1734_s30  }
  0x17   : > { %2253 = sst [smem:[#allocation18_spill]] %s1847_s17  ;;  %s38_s18 = sadd.s32 1, %s1730_s29 }
  0x18   : > { %p1842_p11 = pnand %p1456_p9, %p2235_p1  ;;  %s35_s19 = ssub.s32 %s1734_s30, %s1847_s17 }
  0x19   : > { %s2254_s2 = sld [smem:[#allocation21_spill]] }
  0x1a   : > { %p1542_p13 = pneg %p1842_p11 }
  0x1f   : > { %s1540_s22 = scalar_lea.hbm %s2254_s2, 256 }
  0x20   : > { %p1541_p12 = scmp.ne.s32.totalorder %s2254_s2, %s1540_s22  ;;  %p1547_p5 = scmp.lt.u32.totalorder %s1540_s22, %s2254_s2 }
  0x22   : > { %p1543_p0 = pnand %p1542_p13, %p1541_p12 }
  0x24   : > { %p1544_p3 = pneg %p1543_p0 }
  0x26   : > { %p1549_p7 = pnand %p1547_p5, %p1544_p3 }
  0x28   : > { %1552 = shalt.err (!%p1549_p7)
}
  0x29   : > { %s1553_s10 = scalar_lea.vmem %s1835_s15, 256  ;;  %p1561_p2 = scmp.lt.s32.totalorder %s1835_s15, %s1835_s15 }
  0x2a   : > { %p1554_p9 = scmp.ne.s32.totalorder %s1835_s15, %s1553_s10  ;;  %p1562_p6 = scmp.lt.s32.totalorder %s1553_s10, %s1553_s10 }
  0x2c   : > { %p1556_p10 = pnand %p1554_p9, %p1542_p13  ;;  %p1563_p4 = por %p1562_p6, %p1561_p2 }
  0x2e   : > { %p1557_p1 = pneg %p1556_p10 }
  0x30   : > { %p1564_p8 = pnand %p1563_p4, %p1557_p1 }
  0x32   : > { %1567 = shalt.err (!%p1564_p8)
}
  0x33   : > { %s2238_s14 = smov 64   ;;  %s2239_s20 = smov 4  }
  0x34   : > { %1459 = dma.hbm_to_vmem [thread:$0]  (!%p1842_p11), %s2254_s2, 256, %s1835_s15, [#allocation6], %s2238_s14, %s2238_s14, %s2239_s20  }
  0x35   : > { %p36_p1 = scmp.eq.s32.totalorder %s35_s19, 0  ;;  %p45_p2 = scmp.ne.s32.totalorder %s1730_s29, %s1726_s28 }
  0x36   : > { %p46_p4 = scmp.eq.s32.totalorder %s1734_s30, 0  ;;  %p1475_p6 = scmp.lt.s32.totalorder %s1734_s30, 2 }
  0x37   : > { %s1881_s23 = scalar_select %p36_p1, %s1730_s29, %s38_s18  }
  0x38   : > { %p47_p8 = por %p46_p4, %p45_p2  ;;  %p2256_p10 = scmp.eq.s32.totalorder %s1812_s9, 1 }
  0x39   : > { %2255 = sst [smem:[#allocation19_spill]] %s1881_s23  ;;  %s1890_s16 = sand.u32 1, %s1730_s29  }
  0x3a   : > { %p1885_p12 = por %p2256_p10, %p45_p2  ;;  %s1398_s25 = sshll.u32 %s1734_s30, 10 }
  0x3b   : > { %s1355_s26 = sshll.u32 %s1890_s16, 6  ;;  %s2258_s0 = sld [smem:[#allocation20_spill]] }
  0x3c   : > { %s2257_s24 = scalar_select %p1885_p12, 1, 0 }
  0x3d   : > { %s287_s18 = scalar_lea.vmem [#allocation2], %s1355_s26  ;;  %p1899_p11 = pnand %p1475_p6, %p47_p8 }
  0x3e   : > { %s295_s21 = sshll.u32 %s287_s18, 4  ;;  %s284_s20 = scalar_lea.sflag [#allocation3], %s1890_s16  ;;  %s1903_s21 = int_to_ptr.vmem [resolvable:$true] %s295_s21 }
  0x3f   : > { %p1570_p0 = pneg %p1899_p11 }
  0x41   : > { %s1897_s19 = scalar_lea.hbm %s2258_s0, %s1398_s25  ;;  %s1573_s15 = scalar_lea.hbm %s2258_s0, 2048 }
  0x42   : > { %s1568_s2 = scalar_lea.hbm %s1897_s19, 1024  ;;  %p1574_p7 = scmp.lt.u32.totalorder %s1897_s19, %s2258_s0 }
  0x43   : > { %p1569_p13 = scmp.ne.s32.totalorder %s1897_s19, %s1568_s2  ;;  %p1575_p9 = scmp.lt.u32.totalorder %s1573_s15, %s1568_s2 }
  0x44   : > { %p1577_p2 = scmp.lt.u32.totalorder %s1568_s2, %s1897_s19 }
  0x45   : > { %p1571_p3 = pnand %p1570_p0, %p1569_p13  ;;  %p1576_p1 = por %p1575_p9, %p1574_p7 }
  0x47   : > { %p1572_p5 = pneg %p1571_p3  ;;  %p1578_p4 = por %p1577_p2, %p1576_p1 }
  0x49   : > { %p1579_p6 = pnand %p1578_p4, %p1572_p5 }
  0x4b   : > { %1582 = shalt.err (!%p1579_p6)
}
  0x4c   : > { %s1583_s14 = scalar_lea.vmem %s1903_s21, 1024  ;;  %s1739_s25 = smov [#allocation2]  }
  0x4d   : > { %p1584_p8 = scmp.ne.s32.totalorder %s1903_s21, %s1583_s14  ;;  %s1588_s26 = sshll.u32 %s1739_s25, 4  ;;  %s1589_s26 = int_to_ptr.vmem [resolvable:$false] %s1588_s26 }
  0x4e   : > { %s1590_s10 = scalar_lea.vmem %s1589_s26, 2048  ;;  %p1591_p3 = scmp.lt.s32.totalorder %s1903_s21, %s1589_s26 }
  0x4f   : > { %p1586_p10 = pnand %p1584_p8, %p1570_p0  ;;  %p1592_p7 = scmp.lt.s32.totalorder %s1590_s10, %s1583_s14 }
  0x51   : > { %p1587_p13 = pneg %p1586_p10  ;;  %p1593_p9 = por %p1592_p7, %p1591_p3 }
  0x53   : > { %p1594_p1 = pnand %p1593_p9, %p1587_p13 }
  0x55   : > { %1597 = shalt.err (!%p1594_p1)
}
  0x56   : > { %s2260_s2 = smov 4   ;;  %s2261_s15 = smov 64  }
  0x57   : > { %1463 = dma.hbm_to_vmem [thread:$0]  (!%p1899_p11), %s1897_s19, 1024, %s1903_s21, %s284_s20, %s2261_s15, %s2261_s15, %s2260_s2  }
  0x58   : > { %s1359_s18 = sshll.u32 %s1890_s16, 2  ;;  %s1360_s25 = sshll.u32 %s1734_s30, 6 }
  0x59   : > { %s1942_s10 = scalar_lea.hbm %s2227_s1, %s1360_s25  ;;  %s309_s0 = scalar_lea.vmem [#allocation5], %s1359_s18 }
  0x5a   : > { %s316_s23 = sshll.u32 %s309_s0, 4  ;;  %s2262_s29 = sand.u32 1, %s1734_s30   ;;  %s317_s23 = int_to_ptr.vmem [resolvable:$true] %s316_s23 }
  0x5b   : > { %s306_s17 = scalar_lea.sflag [#allocation6], %s2262_s29  ;;  %s1598_s12 = scalar_lea.hbm %s1942_s10, 64 }
  0x5c   : > { %p1599_p5 = scmp.ne.s32.totalorder %s1942_s10, %s1598_s12  ;;  %s1603_s19 = scalar_lea.hbm %s2227_s1, 128 }
  0x5d   : > { %p1604_p6 = scmp.lt.u32.totalorder %s1942_s10, %s2227_s1  ;;  %p1605_p8 = scmp.lt.u32.totalorder %s1603_s19, %s1598_s12 }
  0x5e   : > { %p1601_p2 = pnand %p1599_p5, %p1570_p0  ;;  %p1607_p13 = scmp.lt.u32.totalorder %s1598_s12, %s1942_s10 }
  0x5f   : > { %p1606_p10 = por %p1605_p8, %p1604_p6 }
  0x60   : > { %p1602_p4 = pneg %p1601_p2 }
  0x61   : > { %p1608_p3 = por %p1607_p13, %p1606_p10 }
  0x63   : > { %p1609_p7 = pnand %p1608_p3, %p1602_p4 }
  0x65   : > { %1612 = shalt.err (!%p1609_p7)
}
  0x66   : > { %s1613_s0 = scalar_lea.vmem %s317_s23, 64  ;;  %s1740_s29 = smov [#allocation5]  }
  0x67   : > { %p1614_p9 = scmp.ne.s32.totalorder %s317_s23, %s1613_s0  ;;  %s1618_s15 = sshll.u32 %s1740_s29, 4  ;;  %s1619_s15 = int_to_ptr.vmem [resolvable:$false] %s1618_s15 }
  0x68   : > { %s1620_s18 = scalar_lea.vmem %s1619_s15, 128  ;;  %p1621_p2 = scmp.lt.s32.totalorder %s317_s23, %s1619_s15 }
  0x69   : > { %p1616_p1 = pnand %p1614_p9, %p1570_p0  ;;  %p1622_p12 = scmp.lt.s32.totalorder %s1620_s18, %s1613_s0 }
  0x6b   : > { %p1617_p5 = pneg %p1616_p1  ;;  %p1623_p6 = por %p1622_p12, %p1621_p2 }
  0x6d   : > { %p1624_p8 = pnand %p1623_p6, %p1617_p5 }
  0x6f   : > { %1627 = shalt.err (!%p1624_p8)
}
  0x70   : > { %1466 = dma.hbm_to_vmem [thread:$0]  (!%p1899_p11), %s1942_s10, 64, %s317_s23, %s306_s17  }
  0x71   : > { %p2263_p4 = scmp.ne.s32.totalorder %s2251_s13, 0 }
  0x72   : > { %s1968_s12 = sand.u32 (!%p2263_p4), 1, %s1726_s28   ;;  %p2264_p12 = scmp.ne.s32.totalorder (!%p2263_p4), %s2248_s11, 0 }
  0x73   : > { %325 = sbr.rel (%p2263_p4) target bundleno = 1052 (0x41c), region = 48  ;;  %s1362_s25 = sshll.u32 (!%p2263_p4), %s1968_s12, 6 }
  0x74   : > { %s328_s14 = scalar_lea.sflag (!%p2263_p4), [#allocation3], %s1968_s12  ;;  %s1972_s26 = scalar_lea.vmem (!%p2263_p4), [#allocation2], %s1362_s25 }
  0x7a   : > { %1701 = dma.done.wait (%p2264_p12), %s328_s14, 1024  }
  0x7b   : > { %1703 = vsyncadd (%p2264_p12), %s328_s14, 4294966272  ;;  %s336_s13 = sand.u32 1, %s1812_s9   ;;  %s1363_s17 = sshll.u32 %s1968_s12, 2 }
  0x7c   : > { %s337_s23 = scalar_lea.sflag [#allocation6], %s336_s13  ;;  %s1980_s22 = scalar_lea.vmem [#allocation5], %s1363_s17 }
  0x7d   : > { %1705 = dma.done.wait (%p2264_p12), %s337_s23, 64  }
  0x7e   : > { %1707 = vsyncadd (%p2264_p12), %s337_s23, 4294967232  ;;  %p2265_p11 = scmp.eq.s32.totalorder %s1812_s9, 0 }
  0x80   : > { %1709 = dma.done.wait (%p2265_p11), [#allocation6], 256   ;;  %p2266_p0 = pmov %p2265_p11 }
  0x81   : > { %v1516_v0 = vld [vmem:[#allocation7] sm:$0xff]   ;;  %v1517_v1 = vld [vmem:[#allocation7 + $0x8] sm:$0xff]   ;;  %v1991_v2 = vld [vmem:[%s1972_s26] sm:$0xff]   ;;  %vm461_vm0 = vcmask 261120   ;;  %v1741_v8 = vmov 0.0   ;;  %vm630_vm1 = vcmask 1043456   ;;  %v679_v17 = vlaneseq }
  0x82   : > { %1711 = vsyncadd (%p2266_p0), [#allocation6], 4294967040  ;;  %1412 = vmatprep.subr.bf16.mxu0 %v1516_v0  ;;  %1440 = vmatprep.subr.bf16.mxu1 %v1516_v0  ;;  %v1994_v3 = vld [vmem:[%s1972_s26 + $0x30] sm:$0xff]   ;;  %v1997_v4 = vld [vmem:[%s1972_s26 + $0x8] sm:$0xff]   ;;  %vm1742_vm2 = vmmov 0   ;;  %vm626_vm3 = vcmask 195584  }
  0x83   : > { %1413 = vmatpush3.bf16.msra.mxu0 %v1516_v0  ;;  %1442 = vmatpush3.bf16.msra.mxu1 %v1516_v0  ;;  %v2000_v5 = vld [vmem:[%s1972_s26 + $0x38] sm:$0xff]   ;;  %v2007_v6 = vld [vmem:[%s1972_s26 + $0x10] sm:$0xff]   ;;  %v1522_v7 = vld [vmem:[%s2230_s4] sm:$0xff]   ;;  %v1743_v15 = vmov 1966171168   ;;  %v2046_v26 = vshrl.u32 %v679_v17, 7 }
  0x84   : > { %1414 = vmatprep.subr.bf16.mxu0 %v1517_v1  ;;  %1441 = vmatprep.subr.bf16.mxu1 %v1517_v1  ;;  %v1523_v9 = vld [vmem:[%s2230_s4 + $0x8] ss:$0 sps:$4 sm:$0xff]   ;;  %v2022_v10 = vld [vmem:[%s1972_s26 + $0x18] sm:$0xff]   ;;  %v2025_v12 = vld [vmem:[%s1972_s26 + $0x20] sm:$0xff]   ;;  %v677_v16 = vunpack.c.l.s4 %v1743_v15  ;;  %vm879_vm4 = vcmask 130112   ;;  %vm944_vm5 = vcmask 1041409  }
  0x85   : > { %1416 = vmatprep.mubr.msk.bf16.mxu0 %vm461_vm0, %v1991_v2  ;;  %1428 = vmatprep.mubr.msk.bf16.mxu1 %vm461_vm0, %v1994_v3  ;;  %v632_v11 = vsel %vm630_vm1, %v1523_v9, 0  ;;  %v606_v13 = vld [vmem:[%s1980_s22] sm:$0xf]  ;;  %v2033_v14 = vld [vmem:[%s1972_s26 + $0x28] sm:$0xff]   ;;  %v2053_v39 = vsub.s32 0, %v2046_v26  ;;  %vm946_vm6 = vcmask 1042434  }
  0x86   : > { %v678_v25 = vunpack.c.0.s8 %v677_v16  ;;  %v1386_v28 = vld [vmem:[%s2231_s5] ss:$0 sm:$0xff]  ;;  %vm948_vm7 = vcmask 1043459   ;;  %vm950_vm8 = vcmask 1044484   ;;  %vm952_vm9 = vcmask 1045509   ;;  %s1365_s18 = sshll.u32 %s1968_s12, 3 }
  0x87   : > { %1415 = vmatpush3.bf16.msra.mxu0 %v1517_v1  ;;  %1443 = vmatpush3.bf16.msra.mxu1 %v1517_v1  ;;  %v1385_v42 = vld [vmem:[%s2229_s3] ss:$0 sm:$0xff]  ;;  %vm954_vm10 = vcmask 1046534   ;;  %vm956_vm11 = vcmask 1047559   ;;  %vm960_vm13 = vcmask 130048   ;;  %s2099_s25 = scalar_lea.vmem [#allocation9], %s1365_s18 }
  0x88   : > { %1432 = vmatprep.subr.bf16.mxu1 %v1741_v8  ;;  %v681_v29 = vsub.s32 %v678_v25, %v2046_v26  ;;  %s1393_s14 = sshll.u32 %s1812_s9, 7  ;;  %s1217_s23 = sshll.u32 %s2099_s25, 4  ;;  %s1218_s23 = int_to_ptr.vmem [resolvable:$true] %s1217_s23 }
  0x89   : > { %s2114_s17 = scalar_lea.hbm %s2234_s8, %s1393_s14  ;;  %s1191_s22 = scalar_lea.sflag [#allocation10], %s1968_s12 }
  0x8a   : > { %1417 = vmatmul.mubr.msk.bf16.vlgmr.msra.gmra.mrb[0].mxu0 %vm461_vm0, %v1997_v4  ;;  %1429 = vmatmul.mubr.msk.bf16.vlgmr.msra.gmra.mrb[0].mxu1 %vm461_vm0, %v2000_v5  ;;  %s1628_s11 = scalar_lea.vmem %s1218_s23, 128  ;;  %p2267_p13 = scmp.ne.s32.totalorder %s2257_s24, 0 }
  0x8b   : > { %1433 = vmatpush3.bf16.msra.mxu1 %v1522_v7  ;;  %1420 = vmatprep.mubr.msk.bf16.mxu0 %vm461_vm0, %v2007_v6  ;;  %p1629_p10 = scmp.ne.s32.totalorder %s1218_s23, %s1628_s11  ;;  %s1744_s10 = smov [#allocation9]  }
  0x8c   : > { %1434 = vmatprep.subr.bf16.mxu1 %v1741_v8  ;;  %1436 = vmatprep.mubr.msk.bf16.mxu1 %vm1742_vm2, %v1741_v8  ;;  %s1632_s20 = sshll.u32 %s1744_s10, 4  ;;  %s1633_s20 = int_to_ptr.vmem [resolvable:$false] %s1632_s20 }
  0x8d   : > { %p1630_p3 = pnand %p1629_p10, %p2267_p13  ;;  %s1634_s16 = scalar_lea.vmem %s1633_s20, 256 }
  0x8e   : > { %p1635_p9 = scmp.lt.s32.totalorder %s1218_s23, %s1633_s20  ;;  %p1636_p1 = scmp.lt.s32.totalorder %s1634_s16, %s1628_s11 }
  0x8f   : > { %1435 = vmatpush3.bf16.msra.mxu1 %v632_v11  ;;  %p1631_p7 = pneg %p1630_p3 }
  0x90   : > { %p1637_p5 = por %p1636_p1, %p1635_p9 }
  0x92   : > { %1421 = vmatmul.mubr.msk.bf16.gmra.mrb[4].mxu0 %vm461_vm0, %v2022_v10  ;;  %1437 = vmatmul.mubr.msk.bf16.vlgmr.msra.gmra.mrb[4].mxu1 %vm626_vm3, %v606_v13  ;;  %p1638_p2 = pnand %p1637_p5, %p1631_p7 }
  0x93   : > { %1424 = vmatprep.mubr.msk.bf16.mxu0 %vm461_vm0, %v2025_v12 }
  0x9a   : > { %1425 = vmatmul.mubr.msk.bf16.gmra.mrb[8].mxu0 %vm461_vm0, %v2033_v14 }
 0x15d   : > { %v2037_v18 = vpop.f32.mrb[0].mxu1  ;;  %v1418_v19 = vpop.f32.mrb[0].mxu0 }
 0x15e   : > { %v2039_v20 = vpop.f32.mrb[1].mxu1  ;;  %v520_v21 = vpop.f32.mrb[1].mxu0 }
 0x15f   : > { %v2041_v22 = vpop.f32.mrb[2].mxu1  ;;  %v1419_v23 = vpop.f32.mrb[2].mxu0 }
 0x160   : > { %v2043_v24 = vpop.f32.mrb[3].mxu1  ;;  %v523_v27 = vpop.f32.mrb[3].mxu0  ;;  %v593_v46 = vadd.f32 %v1419_v23, %v1385_v42 }
 0x161   : > { %v591_v47 = vadd.f32 %v1385_v42, %v523_v27 }
 0x165   : > { %v668_v30 = vpop.f32.mrb[4].mxu1  ;;  %v1422_v31 = vpop.f32.mrb[4].mxu0 }
 0x166   : > { %v669_v32 = vadd.f32 %v1386_v28, %v668_v30  ;;  %v1438_v33 = vpop.f32.mrb[5].mxu1  ;;  %v536_v34 = vpop.f32.mrb[5].mxu0  ;;  %v596_v53 = vadd.f32 %v1422_v31, %v1385_v42  ;;  %v590_v28 = vadd.f32 %v1385_v42, %v520_v21 }
 0x167   : > { %v671_v35 = vpop.f32.mrb[6].mxu1  ;;  %v1423_v36 = vpop.f32.mrb[6].mxu0  ;;  %v594_v48 = vadd.f32 %v1385_v42, %v536_v34 }
 0x168   : > { %v675_v37 = vcombine.high %v669_v32, %v669_v32  ;;  %v682_v38 = vrot.slane %v669_v32, %v681_v29  ;;  %v1439_v40 = vpop.f32.mrb[7].mxu1  ;;  %v539_v41 = vpop.f32.mrb[7].mxu0  ;;  %v597_v54 = vadd.f32 %v1423_v36, %v1385_v42  ;;  %v592_v32 = vadd.f32 %v1418_v19, %v1385_v42  ;;  %v1390_v36 = vld [vmem:[%s2232_s6] ss:$0 sm:$0xff] }
 0x169   : > { %v595_v55 = vadd.f32 %v1385_v42, %v539_v41  ;;  %v604_v19 = vadd.f32 %v2037_v18, %v1385_v42 }
 0x16a   : > { %v689_v43 = vrot.slane %v675_v37, %v681_v29  ;;  %v690_v44 = vcombine.high %v682_v38, %v682_v38  ;;  %v698_v45 = vrot.slane %v682_v38, %v681_v29 }
 0x16c   : > { %v691_v49 = vcombine.high %v689_v43, %v689_v43  ;;  %v712_v50 = vrot.slane %v690_v44, %v681_v29  ;;  %v727_v51 = vrot.slane %v698_v45, %v2053_v39  ;;  %v720_v52 = vcombine.high %v698_v45, %v698_v45 }
 0x16d   : > { %v1426_v56 = vpop.f32.mrb[8].mxu0  ;;  %v705_v57 = vrot.slane %v689_v43, %v681_v29 }
 0x16e   : > { %v731_v58 = vrot.slane %v712_v50, %v2053_v39  ;;  %v765_v59 = vadd.f32 %v727_v51, %v591_v47  ;;  %v722_v60 = vcombine.high %v712_v50, %v712_v50  ;;  %v735_v61 = vrot.slane %v720_v52, %v2053_v39  ;;  %v552_v62 = vpop.f32.mrb[9].mxu0 }
 0x16f   : > { %v600_v63 = vadd.f32 %v1426_v56, %v1385_v42  ;;  %v719_v0 = vrot.slane %v691_v49, %v681_v29  ;;  %v598_v1 = vadd.f32 %v1385_v42, %v552_v62  ;;  %v743_v7 = vrot.slane %v705_v57, %v2053_v39  ;;  %v1427_v8 = vpop.f32.mrb[10].mxu0 }
 0x170   : > { %v767_v9 = vadd.f32 %v731_v58, %v593_v46  ;;  %v739_v11 = vrot.slane %v722_v60, %v2053_v39  ;;  %v768_v13 = vadd.f32 %v735_v61, %v594_v48  ;;  %v555_v15 = vpop.f32.mrb[11].mxu0  ;;  %v769_v16 = vadd.f32 %v735_v61, %v595_v55 }
 0x171   : > { %v747_v23 = vrot.slane %v719_v0, %v2053_v39  ;;  %v772_v25 = vadd.f32 %v743_v7, %v598_v1  ;;  %v601_v27 = vadd.f32 %v1427_v8, %v1385_v42  ;;  %v599_v34 = vadd.f32 %v1385_v42, %v555_v15 }
 0x172   : > { %v770_v30 = vadd.f32 %v739_v11, %v596_v53  ;;  %v771_v31 = vadd.f32 %v739_v11, %v597_v54  ;;  %v764_v35 = vadd.f32 %v727_v51, %v590_v28  ;;  %v766_v37 = vadd.f32 %v731_v58, %v592_v32 }
 0x173   : > { %v774_v33 = vadd.f32 %v747_v23, %v600_v63  ;;  %v775_v29 = vadd.f32 %v747_v23, %v601_v27  ;;  %v773_v38 = vadd.f32 %v743_v7, %v599_v34  ;;  %v783_v43 = vmax.f32 %v767_v9, 0.0 }
 0x174   : > { %v780_v40 = vmax.f32 %v764_v35, 0.0  ;;  %v782_v41 = vmax.f32 %v766_v37, 0.0  ;;  %v781_v44 = vmax.f32 %v765_v59, 0.0  ;;  %v721_v21 = vcombine.high %v705_v57, %v705_v57 }
 0x175   : > { %v723_v47 = vcombine.high %v719_v0, %v719_v0  ;;  %v602_v48 = vadd.f32 %v1385_v42, %v2039_v20  ;;  %v605_v49 = vadd.f32 %v2041_v22, %v1385_v42  ;;  %v603_v50 = vadd.f32 %v1385_v42, %v2043_v24 }
 0x176   : > { %v803_v45 = vmul.f32 %v1390_v36, %v780_v40  ;;  %v805_v46 = vmul.f32 %v1390_v36, %v782_v41  ;;  %v751_v51 = vrot.slane %v721_v21, %v2053_v39  ;;  %v784_v53 = vmax.f32 %v768_v13, 0.0 }
 0x177   : > { %v755_v52 = vrot.slane %v723_v47, %v2053_v39  ;;  %v785_v54 = vmax.f32 %v769_v16, 0.0  ;;  %v804_v55 = vmul.f32 %v1390_v36, %v781_v44  ;;  %v806_v56 = vmul.f32 %v1390_v36, %v783_v43 }
 0x178   : > { %819 = vadd.xlane.f32.xlu0 %v803_v45  ;;  %823 = vadd.xlane.f32.xlu1 %v805_v46  ;;  %v777_v57 = vadd.f32 %v751_v51, %v603_v50  ;;  %v776_v58 = vadd.f32 %v751_v51, %v602_v48  ;;  %v788_v20 = vmax.f32 %v772_v25, 0.0  ;;  %v807_v60 = vmul.f32 %v1390_v36, %v784_v53 }
 0x179   : > { %v778_v59 = vadd.f32 %v755_v52, %v604_v19  ;;  %v779_v18 = vadd.f32 %v755_v52, %v605_v49  ;;  %v787_v22 = vmax.f32 %v771_v31, 0.0  ;;  %v808_v61 = vmul.f32 %v1390_v36, %v785_v54 }
 0x17a   : > { %v786_v24 = vmax.f32 %v770_v30, 0.0  ;;  %v811_v42 = vmul.f32 %v1390_v36, %v788_v20  ;;  %v791_v62 = vmax.f32 %v775_v29, 0.0  ;;  %v790_v0 = vmax.f32 %v774_v33, 0.0 }
 0x17b   : > { %v810_v63 = vmul.f32 %v1390_v36, %v787_v22  ;;  %v793_v8 = vmax.f32 %v777_v57, 0.0  ;;  %v792_v11 = vmax.f32 %v776_v58, 0.0  ;;  %v789_v13 = vmax.f32 %v773_v38, 0.0 }
 0x17c   : > { %821 = vadd.xlane.f32.xlu0 %v804_v55  ;;  %825 = vadd.xlane.f32.xlu1 %v806_v56  ;;  %v809_v1 = vmul.f32 %v1390_v36, %v786_v24  ;;  %v814_v7 = vmul.f32 %v1390_v36, %v791_v62  ;;  %v813_v9 = vmul.f32 %v1390_v36, %v790_v0  ;;  %v794_v23 = vmax.f32 %v778_v59, 0.0 }
 0x17d   : > { %v816_v15 = vmul.f32 %v1390_v36, %v793_v8  ;;  %v815_v16 = vmul.f32 %v1390_v36, %v792_v11  ;;  %v812_v25 = vmul.f32 %v1390_v36, %v789_v13  ;;  %v795_v27 = vmax.f32 %v779_v18, 0.0 }
 0x17e   : > { %v817_v28 = vmul.f32 %v1390_v36, %v794_v23  ;;  %v852_v37 = vand.u32 127, %v679_v17 }
 0x17f   : > { %v818_v30 = vmul.f32 %v1390_v36, %v795_v27 }
 0x180   : > { %827 = vadd.xlane.f32.xlu0 %v807_v60  ;;  %829 = vadd.xlane.f32.xlu1 %v808_v61  ;;  %v874_v40 = vadd.s32 4294967288, %v852_v37  ;;  %v872_v46 = vsub.s32 %v852_v37, %v2046_v26  ;;  %vm853_vm12 = vcmp.lt.s32.totalorder %v852_v37, 8 }
 0x182   : > { %v877_v44 = vsub.s32 %v874_v40, %v2046_v26 }
 0x184   : > { %835 = vadd.xlane.f32.xlu0 %v811_v42  ;;  %833 = vadd.xlane.f32.xlu1 %v810_v63 }
 0x188   : > { %831 = vadd.xlane.f32.xlu0 %v809_v1  ;;  %841 = vadd.xlane.f32.xlu1 %v814_v7 }
 0x18c   : > { %839 = vadd.xlane.f32.xlu0 %v813_v9  ;;  %845 = vadd.xlane.f32.xlu1 %v816_v15 }
 0x190   : > { %843 = vadd.xlane.f32.xlu0 %v815_v16  ;;  %837 = vadd.xlane.f32.xlu1 %v812_v25 }
 0x194   : > { %847 = vadd.xlane.f32.xlu0 %v817_v28  ;;  %849 = vadd.xlane.f32.xlu1 %v818_v30 }
 0x205   : > { %v820_v31 = vpop.xlane.xlu0 %819  ;;  %v824_v32 = vpop.xlane.xlu1 %823 }
 0x206   : > { %v884_v19 = vrot.slane %v824_v32, %v872_v46  ;;  %v873_v52 = vrot.slane %v820_v31, %v872_v46 }
 0x209   : > { %v822_v33 = vpop.xlane.xlu0 %821  ;;  %v826_v29 = vpop.xlane.xlu1 %825 }
 0x20a   : > { %v888_v36 = vrot.slane %v826_v29, %v877_v44  ;;  %v878_v48 = vrot.slane %v822_v33, %v877_v44 }
 0x20c   : > { %v889_v17 = vsel %vm879_vm4, %v888_v36, %v884_v19  ;;  %v880_v56 = vsel %vm879_vm4, %v878_v48, %v873_v52  ;;  %v1032_v48 = vsub.s32 5, %v2046_v26  ;;  %v1054_v52 = vsub.s32 7, %v2046_v26 }
 0x20d   : > { %v828_v34 = vpop.xlane.xlu0 %827  ;;  %v830_v35 = vpop.xlane.xlu1 %829  ;;  %v945_v18 = vsel %vm944_vm5, %v889_v17, %v880_v56 }
 0x20e   : > { %v897_v21 = vrot.slane %v830_v35, %v877_v44  ;;  %v893_v51 = vrot.slane %v828_v34, %v872_v46 }
 0x210   : > { %v898_v54 = vsel %vm879_vm4, %v897_v21, %v893_v51  ;;  %v1010_v21 = vsub.s32 3, %v2046_v26 }
 0x211   : > { %v836_v38 = vpop.xlane.xlu0 %835  ;;  %v834_v41 = vpop.xlane.xlu1 %833  ;;  %v947_v61 = vsel %vm946_vm6, %v898_v54, %v945_v18 }
 0x212   : > { %v906_v53 = vrot.slane %v834_v41, %v877_v44  ;;  %v911_v20 = vrot.slane %v836_v38, %v872_v46 }
 0x215   : > { %v832_v43 = vpop.xlane.xlu0 %831  ;;  %v842_v45 = vpop.xlane.xlu1 %841 }
 0x216   : > { %v902_v49 = vrot.slane %v832_v43, %v872_v46  ;;  %v924_v24 = vrot.slane %v842_v45, %v877_v44  ;;  %v999_v45 = vsub.s32 2, %v2046_v26 }
 0x218   : > { %v907_v57 = vsel %vm879_vm4, %v906_v53, %v902_v49 }
 0x219   : > { %v840_v47 = vpop.xlane.xlu0 %839  ;;  %v846_v50 = vpop.xlane.xlu1 %845  ;;  %v949_v42 = vsel %vm948_vm7, %v907_v57, %v947_v61 }
 0x21a   : > { %v920_v58 = vrot.slane %v840_v47, %v872_v46  ;;  %v933_v62 = vrot.slane %v846_v50, %v877_v44  ;;  %v1043_v50 = vsub.s32 6, %v2046_v26 }
 0x21c   : > { %v925_v1 = vsel %vm879_vm4, %v924_v24, %v920_v58 }
 0x21d   : > { %v844_v55 = vpop.xlane.xlu0 %843  ;;  %v838_v59 = vpop.xlane.xlu1 %837 }
 0x21e   : > { %v929_v60 = vrot.slane %v844_v55, %v872_v46  ;;  %v915_v22 = vrot.slane %v838_v59, %v877_v44 }
 0x220   : > { %v916_v63 = vsel %vm879_vm4, %v915_v22, %v911_v20  ;;  %v934_v9 = vsel %vm879_vm4, %v933_v62, %v929_v60 }
 0x221   : > { %v848_v0 = vpop.xlane.xlu0 %847  ;;  %v951_v7 = vsel %vm950_vm8, %v916_v63, %v949_v42  ;;  %v850_v8 = vpop.xlane.xlu1 %849 }
 0x222   : > { %v938_v11 = vrot.slane %v848_v0, %v872_v46  ;;  %v942_v13 = vrot.slane %v850_v8, %v877_v44  ;;  %v953_v15 = vsel %vm952_vm9, %v925_v1, %v951_v7  ;;  %v988_v44 = vsub.s32 1, %v2046_v26 }
 0x223   : > { %v955_v16 = vsel %vm954_vm10, %v934_v9, %v953_v15 }
 0x224   : > { %v943_v23 = vsel %vm879_vm4, %v942_v13, %v938_v11 }
 0x225   : > { %v957_v25 = vsel %vm956_vm11, %v943_v23, %v955_v16 }
 0x226   : > { %v959_v27 = vsel %vm853_vm12, %v957_v25, -1e+30 }
 0x227   : > { %v961_v28 = vsel %vm960_vm13, %v959_v27, -inf }
 0x228   : > { %962 = vmax.xlane.f32.xlu0 %v961_v28 }
 0x2b5   : > { %v963_v30 = vpop.xlane.xlu0 %962 }
 0x2b6   : > { %v964_v31 = vsub.f32 %v959_v27, %v963_v30 }
 0x2b8   : > { %v965_v32 = vmul.f32 1.442695, %v964_v31 }
 0x2ba   : > { %1536 = vpow2.f32 %v965_v32 }
 0x2c4   : > { %v1537_v33 = vpop.eup %1536 }
 0x2c5   : > { %v967_v29 = vsel %vm960_vm13, %v1537_v33, 0.0 }
 0x2c6   : > { %968 = vadd.xlane.f32.xlu1 %v967_v29 }
 0x353   : > { %v969_v34 = vpop.xlane.xlu1 %968 }
 0x354   : > { %1538 = vrcp.f32 %v969_v34 }
 0x35e   : > { %v1539_v35 = vpop.eup %1538 }
 0x35f   : > { %v971_v37 = vmul.f32 %v1539_v35, %v969_v34 }
 0x361   : > { %v972_v38 = vsub.f32 2.0, %v971_v37 }
 0x363   : > { %v973_v40 = vmul.f32 %v1539_v35, %v972_v38 }
 0x365   : > { %v974_v41 = vmul.f32 %v1537_v33, %v973_v40 }
 0x367   : > { %v978_v43 = vrot.slane %v974_v41, %v2053_v39  ;;  %1184 = vst.msk [vmem:[%s2099_s25] sm:$0xff] %vm960_vm13, %v974_v41  ;;  %v989_v46 = vrot.slane %v974_v41, %v988_v44  ;;  %v1000_v36 = vrot.slane %v974_v41, %v999_v45  ;;  %v1011_v47 = vrot.slane %v974_v41, %v1010_v21 }
 0x368   : > { %v1021_v39 = vsub.s32 4, %v2046_v26  ;;  %v1033_v49 = vrot.slane %v974_v41, %v1032_v48  ;;  %v1044_v51 = vrot.slane %v974_v41, %v1043_v50  ;;  %v1055_v17 = vrot.slane %v974_v41, %v1054_v52 }
 0x369   : > { %984 = vbcast.lane.b32.xlu1 %v978_v43, 264  ;;  %980 = vbcast.lane.b32.xlu0 %v978_v43, 256 }
 0x36a   : > { %v1022_v19 = vrot.slane %v974_v41, %v1021_v39 }
 0x36d   : > { %991 = vbcast.lane.b32.xlu1 %v989_v46, 256  ;;  %1002 = vbcast.lane.b32.xlu0 %v1000_v36, 256 }
 0x371   : > { %995 = vbcast.lane.b32.xlu1 %v989_v46, 264  ;;  %1013 = vbcast.lane.b32.xlu0 %v1011_v47, 256 }
 0x375   : > { %1006 = vbcast.lane.b32.xlu1 %v1000_v36, 264  ;;  %1024 = vbcast.lane.b32.xlu0 %v1022_v19, 256 }
 0x379   : > { %1017 = vbcast.lane.b32.xlu1 %v1011_v47, 264  ;;  %1035 = vbcast.lane.b32.xlu0 %v1033_v49, 256 }
 0x37d   : > { %1028 = vbcast.lane.b32.xlu1 %v1022_v19, 264  ;;  %1046 = vbcast.lane.b32.xlu0 %v1044_v51, 256 }
 0x381   : > { %1039 = vbcast.lane.b32.xlu1 %v1033_v49, 264  ;;  %1057 = vbcast.lane.b32.xlu0 %v1055_v17, 256 }
 0x385   : > { %1050 = vbcast.lane.b32.xlu1 %v1044_v51, 264 }
 0x389   : > { %1061 = vbcast.lane.b32.xlu1 %v1055_v17, 264 }
 0x38a   : > { %1641 = shalt.err (!%p1638_p2)
}
 0x38b   : > { %s1642_s19 = scalar_lea.hbm %s2114_s17, 128  ;;  %s1646_s0 = scalar_lea.hbm %s2234_s8, 256 }
 0x38c   : > { %p1643_p6 = scmp.ne.s32.totalorder %s2114_s17, %s1642_s19  ;;  %p1647_p12 = scmp.lt.u32.totalorder %s2114_s17, %s2234_s8 }
 0x38d   : > { %p1648_p11 = scmp.lt.u32.totalorder %s1646_s0, %s1642_s19  ;;  %p1650_p10 = scmp.lt.u32.totalorder %s1642_s19, %s2114_s17 }
 0x38e   : > { %p1644_p8 = pnand %p1643_p6, %p2267_p13 }
 0x38f   : > { %p1649_p0 = por %p1648_p11, %p1647_p12 }
 0x390   : > { %p1645_p4 = pneg %p1644_p8 }
 0x391   : > { %p1651_p3 = por %p1650_p10, %p1649_p0 }
 0x393   : > { %p1652_p7 = pnand %p1651_p3, %p1645_p4 }
 0x395   : > { %1655 = shalt.err (!%p1652_p7)
}
 0x396   : > { %1453 = dma.vmem_to_hbm [thread:$0]  (%p2267_p13), %s1218_s23, 128, %s2114_s17, %s1191_s22   ;;  %v1066_v56 = vunpack.c.h.bf16 %v1997_v4  ;;  %v1064_v57 = vunpack.c.h.bf16 %v1991_v2  ;;  %v1063_v58 = vunpack.c.l.bf16 %v1991_v2  ;;  %v1065_v59 = vunpack.c.l.bf16 %v1997_v4 }
 0x397   : > { %v1067_v18 = vunpack.c.l.bf16 %v2007_v6  ;;  %v1068_v61 = vunpack.c.h.bf16 %v2007_v6  ;;  %v1069_v63 = vunpack.c.l.bf16 %v2022_v10  ;;  %v1070_v4 = vunpack.c.h.bf16 %v2022_v10  ;;  %s379_s25 = scalar_lea.vmem [#allocation8], %s1365_s18  ;;  %s2180_s23 = scalar_lea.hbm %s2233_s7, %s1393_s14 }
 0x398   : > { %v1071_v11 = vunpack.c.l.bf16 %v2025_v12  ;;  %v1072_v10 = vunpack.c.h.bf16 %v2025_v12  ;;  %v1073_v35 = vunpack.c.l.bf16 %v2033_v14  ;;  %v1074_v44 = vunpack.c.h.bf16 %v2033_v14  ;;  %s1204_s26 = sshll.u32 %s379_s25, 4  ;;  %s1186_s18 = scalar_lea.sflag [#allocation4], %s1968_s12  ;;  %s2182_s26 = int_to_ptr.vmem [resolvable:$true] %s1204_s26 }
 0x399   : > { %v1075_v39 = vunpack.c.l.bf16 %v1994_v3  ;;  %v1076_v52 = vunpack.c.h.bf16 %v1994_v3  ;;  %s1656_s22 = scalar_lea.vmem %s2182_s26, 128  ;;  %s1745_s9 = smov [#allocation8]  }
 0x39a   : > { %p1657_p9 = scmp.ne.s32.totalorder %s2182_s26, %s1656_s22  ;;  %s1660_s11 = sshll.u32 %s1745_s9, 4  ;;  %s1661_s11 = int_to_ptr.vmem [resolvable:$false] %s1660_s11 }
 0x39b   : > { %s1662_s14 = scalar_lea.vmem %s1661_s11, 256  ;;  %p1663_p2 = scmp.lt.s32.totalorder %s2182_s26, %s1661_s11 }
 0x39c   : > { %p1658_p1 = pnand %p1657_p9, %p2267_p13  ;;  %p1664_p6 = scmp.lt.s32.totalorder %s1662_s14, %s1656_s22 }
 0x39e   : > { %p1659_p5 = pneg %p1658_p1  ;;  %p1665_p8 = por %p1664_p6, %p1663_p2 }
 0x3a0   : > { %p1666_p4 = pnand %p1665_p8, %p1659_p5 }
 0x3db   : > { %v985_v26 = vpop.permute.xlu1 %984  ;;  %v981_v53 = vpop.permute.xlu0 %980 }
 0x3dc   : > { %v1080_v24 = vmul.f32 %v1064_v57, %v985_v26  ;;  %v1079_v42 = vmul.f32 %v1063_v58, %v981_v53 }
 0x3de   : > { %v1096_v9 = vsel %vm461_vm0, %v1080_v24, 0.0  ;;  %v1095_v13 = vsel %vm461_vm0, %v1079_v42, 0.0 }
 0x3df   : > { %v992_v54 = vpop.permute.xlu1 %991  ;;  %v1003_v55 = vpop.permute.xlu0 %1002  ;;  %v1097_v32 = vadd.f32 %v1096_v9, %v1095_v13 }
 0x3e0   : > { %v1081_v62 = vmul.f32 %v1065_v59, %v992_v54  ;;  %v1083_v0 = vmul.f32 %v1067_v18, %v1003_v55 }
 0x3e1   : > { %v1098_v45 = vrot.slane %v1097_v32, 4 }
 0x3e2   : > { %v1104_v6 = vsel %vm461_vm0, %v1081_v62, 0.0  ;;  %v1113_v23 = vsel %vm461_vm0, %v1083_v0, 0.0 }
 0x3e3   : > { %v996_v20 = vpop.permute.xlu1 %995  ;;  %v1014_v60 = vpop.permute.xlu0 %1013  ;;  %v1099_v17 = vadd.f32 %v1098_v45, %v1097_v32 }
 0x3e4   : > { %v1082_v22 = vmul.f32 %v1066_v56, %v996_v20  ;;  %v1085_v15 = vmul.f32 %v1069_v63, %v1014_v60  ;;  %v1077_v56 = vunpack.c.l.bf16 %v2000_v5 }
 0x3e5   : > { %v1100_v3 = vrot.slane %v1099_v17, 2 }
 0x3e6   : > { %v1105_v8 = vsel %vm461_vm0, %v1082_v22, 0.0  ;;  %v1122_v33 = vsel %vm461_vm0, %v1085_v15, 0.0 }
 0x3e7   : > { %v1007_v1 = vpop.permute.xlu1 %1006  ;;  %v1025_v7 = vpop.permute.xlu0 %1024  ;;  %v1106_v25 = vadd.f32 %v1105_v8, %v1104_v6  ;;  %v1101_v13 = vadd.f32 %v1100_v3, %v1099_v17 }
 0x3e8   : > { %v1084_v2 = vmul.f32 %v1068_v61, %v1007_v1  ;;  %v1087_v29 = vmul.f32 %v1071_v11, %v1025_v7  ;;  %v1078_v61 = vunpack.c.h.bf16 %v2000_v5 }
 0x3e9   : > { %v1107_v37 = vrot.slane %v1106_v25, 4  ;;  %v1102_v32 = vrot.slane %v1101_v13, 1 }
 0x3ea   : > { %v1114_v16 = vsel %vm461_vm0, %v1084_v2, 0.0  ;;  %v1131_v12 = vsel %vm461_vm0, %v1087_v29, 0.0 }
 0x3eb   : > { %v1018_v27 = vpop.permute.xlu1 %1017  ;;  %v1036_v28 = vpop.permute.xlu0 %1035  ;;  %v1115_v30 = vadd.f32 %v1114_v16, %v1113_v23  ;;  %v1108_v19 = vadd.f32 %v1107_v37, %v1106_v25 }
 0x3ec   : > { %v1086_v31 = vmul.f32 %v1070_v4, %v1018_v27  ;;  %v1089_v21 = vmul.f32 %v1073_v35, %v1036_v28 }
 0x3ed   : > { %v1116_v41 = vrot.slane %v1115_v30, 4  ;;  %v1109_v57 = vrot.slane %v1108_v19, 2 }
 0x3ee   : > { %v1123_v34 = vsel %vm461_vm0, %v1086_v31, 0.0  ;;  %v1140_v53 = vsel %vm461_vm0, %v1089_v21, 0.0 }
 0x3ef   : > { %v1124_v38 = vadd.f32 %v1123_v34, %v1122_v33  ;;  %v1029_v40 = vpop.permute.xlu1 %1028  ;;  %v1047_v36 = vpop.permute.xlu0 %1046  ;;  %v1117_v50 = vadd.f32 %v1116_v41, %v1115_v30  ;;  %v1110_v7 = vadd.f32 %v1109_v57, %v1108_v19 }
 0x3f0   : > { %v1088_v43 = vmul.f32 %v1072_v10, %v1029_v40  ;;  %v1091_v54 = vmul.f32 %v1075_v39, %v1047_v36 }
 0x3f1   : > { %v1125_v46 = vrot.slane %v1124_v38, 4  ;;  %v1118_v60 = vrot.slane %v1117_v50, 2  ;;  %v1111_v27 = vrot.slane %v1110_v7, 1 }
 0x3f2   : > { %v1132_v47 = vsel %vm461_vm0, %v1088_v43, 0.0  ;;  %v1149_v63 = vsel %vm461_vm0, %v1091_v54, 0.0 }
 0x3f3   : > { %v1133_v48 = vadd.f32 %v1132_v47, %v1131_v12  ;;  %v1040_v49 = vpop.permute.xlu1 %1039  ;;  %v1126_v26 = vadd.f32 %v1125_v46, %v1124_v38  ;;  %v1058_v18 = vpop.permute.xlu0 %1057  ;;  %v1119_v9 = vadd.f32 %v1118_v60, %v1117_v50  ;;  %v1112_v37 = vadd.f32 %v1111_v27, %v1110_v7 }
 0x3f4   : > { %v1090_v51 = vmul.f32 %v1074_v44, %v1040_v49  ;;  %v1093_v0 = vmul.f32 %v1077_v56, %v1058_v18  ;;  %v1103_v44 = vadd.f32 %v1102_v32, %v1101_v13 }
 0x3f5   : > { %v1134_v14 = vrot.slane %v1133_v48, 4  ;;  %v1127_v24 = vrot.slane %v1126_v26, 2  ;;  %v1120_v10 = vrot.slane %v1119_v9, 1 }
 0x3f6   : > { %v1141_v55 = vsel %vm461_vm0, %v1090_v51, 0.0  ;;  %v1158_v23 = vsel %vm461_vm0, %v1093_v0, 0.0  ;;  %v1175_v21 = vsel %vm944_vm5, %v1112_v37, %v1103_v44 }
 0x3f7   : > { %v1135_v58 = vadd.f32 %v1134_v14, %v1133_v48  ;;  %v1142_v59 = vadd.f32 %v1141_v55, %v1140_v53  ;;  %v1051_v20 = vpop.permute.xlu1 %1050  ;;  %v1128_v6 = vadd.f32 %v1127_v24, %v1126_v26  ;;  %v1121_v43 = vadd.f32 %v1120_v10, %v1119_v9 }
 0x3f8   : > { %v1092_v22 = vmul.f32 %v1076_v52, %v1051_v20 }
 0x3f9   : > { %v1143_v42 = vrot.slane %v1142_v59, 4  ;;  %v1136_v62 = vrot.slane %v1135_v58, 2  ;;  %v1129_v33 = vrot.slane %v1128_v6, 1  ;;  %v1176_v19 = vsel %vm946_vm6, %v1121_v43, %v1175_v21 }
 0x3fa   : > { %v1150_v1 = vsel %vm461_vm0, %v1092_v22, 0.0 }
 0x3fb   : > { %v1144_v8 = vadd.f32 %v1143_v42, %v1142_v59  ;;  %v1151_v2 = vadd.f32 %v1150_v1, %v1149_v63  ;;  %v1062_v4 = vpop.permute.xlu1 %1061  ;;  %v1137_v5 = vadd.f32 %v1136_v62, %v1135_v58  ;;  %v1130_v45 = vadd.f32 %v1129_v33, %v1128_v6 }
 0x3fc   : > { %v1094_v11 = vmul.f32 %v1078_v61, %v1062_v4 }
 0x3fd   : > { %v1145_v15 = vrot.slane %v1144_v8, 2  ;;  %v1152_v16 = vrot.slane %v1151_v2, 4  ;;  %v1138_v35 = vrot.slane %v1137_v5, 1  ;;  %v1177_v49 = vsel %vm948_vm7, %v1130_v45, %v1176_v19 }
 0x3fe   : > { %v1159_v25 = vsel %vm461_vm0, %v1094_v11, 0.0 }
 0x3ff   : > { %v1146_v28 = vadd.f32 %v1145_v15, %v1144_v8  ;;  %v1153_v30 = vadd.f32 %v1152_v16, %v1151_v2  ;;  %v1160_v31 = vadd.f32 %v1159_v25, %v1158_v23  ;;  %v1139_v12 = vadd.f32 %v1138_v35, %v1137_v5 }
 0x401   : > { %v1154_v29 = vrot.slane %v1153_v30, 2  ;;  %v1161_v34 = vrot.slane %v1160_v31, 4  ;;  %v1147_v38 = vrot.slane %v1146_v28, 1  ;;  %v1178_v51 = vsel %vm950_vm8, %v1139_v12, %v1177_v49 }
 0x403   : > { %v1155_v40 = vadd.f32 %v1154_v29, %v1153_v30  ;;  %v1162_v41 = vadd.f32 %v1161_v34, %v1160_v31  ;;  %v1148_v47 = vadd.f32 %v1147_v38, %v1146_v28 }
 0x405   : > { %v1156_v46 = vrot.slane %v1155_v40, 1  ;;  %v1163_v36 = vrot.slane %v1162_v41, 2  ;;  %v1179_v52 = vsel %vm952_vm9, %v1148_v47, %v1178_v51 }
 0x407   : > { %v1164_v39 = vadd.f32 %v1163_v36, %v1162_v41  ;;  %v1157_v48 = vadd.f32 %v1156_v46, %v1155_v40 }
 0x409   : > { %v1165_v50 = vrot.slane %v1164_v39, 1  ;;  %v1180_v26 = vsel %vm954_vm10, %v1157_v48, %v1179_v52 }
 0x40b   : > { %v1166_v17 = vadd.f32 %v1165_v50, %v1164_v39 }
 0x40d   : > { %v1181_v14 = vsel %vm956_vm11, %v1166_v17, %v1180_v26 }
 0x40e   : > { %1183 = vst.msk [vmem:[%s379_s25] sm:$0xff] %vm461_vm0, %v1181_v14 }
 0x40f   : > { %1669 = shalt.err (!%p1666_p4)
}
 0x410   : > { %s1670_s12 = scalar_lea.hbm %s2180_s23, 128  ;;  %s1674_s16 = scalar_lea.hbm %s2233_s7, 256 }
 0x411   : > { %p1671_p12 = scmp.ne.s32.totalorder %s2180_s23, %s1670_s12  ;;  %p1675_p10 = scmp.lt.u32.totalorder %s2180_s23, %s2233_s7 }
 0x412   : > { %p1676_p3 = scmp.lt.u32.totalorder %s1674_s16, %s1670_s12  ;;  %p1678_p9 = scmp.lt.u32.totalorder %s1670_s12, %s2180_s23 }
 0x413   : > { %p1672_p11 = pnand %p1671_p12, %p2267_p13 }
 0x414   : > { %p1677_p7 = por %p1676_p3, %p1675_p10 }
 0x415   : > { %p1673_p0 = pneg %p1672_p11 }
 0x416   : > { %p1679_p1 = por %p1678_p9, %p1677_p7 }
 0x418   : > { %p1680_p5 = pnand %p1679_p1, %p1673_p0 }
 0x41a   : > { %1683 = shalt.err (!%p1680_p5)
}
 0x41b   : > { %1452 = dma.vmem_to_hbm [thread:$0]  (%p2267_p13), %s2182_s26, 128, %s2180_s23, %s1186_s18  }
 0x41c PF: > { %s2268_s2 = sld [smem:[#allocation17_spill]]  ;;  %s1229_s0 = sand.u32 1, %s1722_s27  }
 0x41d   : > { %p2270_p6 = scmp.ge.s32.totalorder %s1734_s30, 2  ;;  %s1230_s29 = scalar_lea.sflag [#allocation4], %s1229_s0 }
 0x422   : > { %p2269_p2 = scmp.ne.s32.totalorder %s2268_s2, 0 }
 0x424   : > { %p1468_p8 = pnand %p2270_p6, %p2269_p2 }
 0x426   : > { %1713 = dma.done.wait (!%p1468_p8), %s1230_s29, 128  }
 0x427   : > { %1715 = vsyncadd (!%p1468_p8), %s1230_s29, 4294967168  ;;  %s1239_s15 = scalar_lea.sflag [#allocation10], %s1229_s0 }
 0x428   : > { %1717 = dma.done.wait (!%p1468_p8), %s1239_s15, 128  }
 0x429   : > { %1719 = vsyncadd (!%p1468_p8), %s1239_s15, 4294967168  ;;  %s2271_s30 = sld [smem:[#allocation18_spill]]  ;;  %s2272_s24 = sld [smem:[#allocation16_spill]] }
 0x42a   : > { %s2273_s29 = sld [smem:[#allocation19_spill]]  ;;  %s2274_s27 = smov %s1726_s28 }
 0x42f   : > { %p28_p13 = scmp.ge.s32.totalorder %s2271_s30, 4   ;;  %s2275_s28 = smov %s2272_s24 }
 0x431   :  { %30 = sbr.rel (!%p28_p13) target bundleno = 12 (0xc), region = 127 }
 0x438   :  { %1244 = vsyncpa [#allocation3], 1 }
 0x439   :  { %1246 = vsyncpa [#allocation3 + $0x1], 1 }
 0x43a   :  { %1247 = vsyncpa [#allocation6], 1 }
 0x43b   :  { %1249 = vsyncpa [#allocation6 + $0x1], 1 }
 0x43c   :  { %1250 = vsyncpa [#allocation4], 1 }
 0x43d   :  { %1252 = vsyncpa [#allocation4 + $0x1], 1 }
 0x43e   :  { %1253 = vsyncpa [#allocation10], 1 }
 0x43f   :  { %1255 = vsyncpa [#allocation10 + $0x1], 1 }

</bundles_post_ra>
